<compile_context>
chip_gen: v7x
topology: tpu7x:2x2x1
jax: 0.10.0
libtpu: 0.0.40
codegen_flags: <defaults>
</compile_context>

<pallas_src>
import functools

import jax
import jax.numpy as jnp
from jax.experimental import pallas as pl
from jax.experimental.pallas import tpu as pltpu

HIDDEN = 128
N_LAYERS = 5           # 4x (Linear + BN + LeakyReLU) + final Linear
BN_EPS = 1e-5
LRELU_SLOPE = 0.2
OUT_DIM = 2
MXU_TARGET_ROWS = 256  # fill the 256-row MXU passes on v6e/v7x (>=128 already saturates v5e)


def _discriminator_kernel(z_ref, w_ref, b_ref, out_ref, *, micro_batch):
    """Fused MLP: 4x (Linear -> BatchNorm1d(train) -> LeakyReLU(0.2)) -> Linear.

    One grid step owns `gps = rows / micro_batch` whole micro-batches, so per-micro-batch
    BatchNorm statistics stay exact while every matmul runs with M = rows on the MXU.

    z_ref:   [rows, 128]   bf16  stacked micro-batches, z zero-padded to 128 lanes
    w_ref:   [5, 128, 128] bf16  layer-packed, zero-padded [in, out] weights
    b_ref:   [1, 128]      f32   final-layer bias only (hidden-layer biases are exactly
                                 cancelled by the BN mean subtraction and are dropped)
    out_ref: [rows, 128]   f32   only lanes [:2] are meaningful
    """
    rows = z_ref.shape[0]
    mb = micro_batch
    gps = rows // mb
    inv_mb = 1.0 / mb

    def bn_lrelu_single(h):
        # One micro-batch per grid step: plain 2-D stats over axis 0.
        s1 = jnp.sum(h, axis=0, keepdims=True)
        s2 = jnp.sum(h * h, axis=0, keepdims=True)      # independent of s1 -> co-issues on XLUs
        mean = s1 * inv_mb
        var = s2 * inv_mb - mean * mean                 # biased variance, E[h^2] - E[h]^2
        hn = (h - mean) * jax.lax.rsqrt(var + BN_EPS)
        return jnp.maximum(hn, LRELU_SLOPE * hn)        # LeakyReLU(0.2): vmul + vmax

    def bn_lrelu_grouped(h):
        # Several micro-batches stacked along the rows: per-group stats via a
        # sublane-aligned (mb % 8 == 0) f32 reshape -- layout preserving, no copy.
        h3 = h.reshape(gps, mb, HIDDEN)
        s1 = jnp.sum(h3, axis=1, keepdims=True)         # [gps, 1, 128]
        s2 = jnp.sum(h3 * h3, axis=1, keepdims=True)    # [gps, 1, 128]
        mean = s1 * inv_mb
        var = s2 * inv_mb - mean * mean
        hn = (h3 - mean) * jax.lax.rsqrt(var + BN_EPS)
        act = jnp.maximum(hn, LRELU_SLOPE * hn)
        return act.reshape(rows, HIDDEN)                # back to 2-D while still f32

    bn_lrelu = bn_lrelu_single if gps == 1 else bn_lrelu_grouped

    x = z_ref[...]                                      # bf16 [rows, 128]
    # Each w_ref[layer] load sits immediately before its dot, keeping weight live
    # ranges short (no 5-tile hoist -> no vreg spills even at rows ~ 256).
    for layer in range(N_LAYERS - 1):
        h = jnp.dot(x, w_ref[layer], preferred_element_type=jnp.float32)
        x = bn_lrelu(h).astype(jnp.bfloat16)            # bf16 operand for the next MXU pass

    # Final Linear (padded to 128 outputs -> lane-dense, unmasked store) + its bias,
    # read straight from the ref (vld) instead of slicing a bias slab (XLU extract).
    logits = jnp.dot(x, w_ref[N_LAYERS - 1], preferred_element_type=jnp.float32)
    out_ref[...] = logits + b_ref[...]


def _choose_groups_per_step(n_groups, micro_batch):
    """Largest divisor of n_groups whose row count fills (without wildly overshooting)
    one MXU pass, keeping the bf16 z block sublane-aligned (rows % 16 == 0) unless the
    block covers the whole array."""
    best = None
    for d in range(1, n_groups + 1):
        if n_groups % d:
            continue
        rows = d * micro_batch
        if rows > max(MXU_TARGET_ROWS, micro_batch):
            continue
        if rows % 16 != 0 and d != n_groups:
            continue
        best = d
    return best if best is not None else n_groups


def make_params(z_dim, key):
    """normal_init: Linear weights ~ N(0, 0.02), all biases = 0; BN gamma=1 / beta=0.

    Returns:
      w_packed:   [5, 128, 128] bf16 -- per-layer [in, out] weights, zero-padded to one
                  uniform 128x128 tile (layer 0: rows >= z_dim zero; layer 4: cols >= 2 zero).
      b_final:    [1, 128] f32 -- final-layer bias, lane-padded. Hidden-layer biases are
                  mathematically cancelled by BatchNorm, so they are not packed at all.
      params_f32: list of (W, b) f32 pairs for the PyTorch-faithful f32 reference.
    """
    dims = [(z_dim, HIDDEN), (HIDDEN, HIDDEN), (HIDDEN, HIDDEN),
            (HIDDEN, HIDDEN), (HIDDEN, OUT_DIM)]
    keys = jax.random.split(key, len(dims))
    params_f32 = []
    w_packed = jnp.zeros((N_LAYERS, HIDDEN, HIDDEN), jnp.float32)
    for i, (k, (fan_in, fan_out)) in enumerate(zip(keys, dims)):
        w = 0.02 * jax.random.normal(k, (fan_in, fan_out), dtype=jnp.float32)
        b = jnp.zeros((fan_out,), jnp.float32)   # normal_init fills biases with 0
        params_f32.append((w, b))
        w_packed = w_packed.at[i, :fan_in, :fan_out].set(w)
    b_final = jnp.zeros((1, HIDDEN), jnp.float32).at[0, :OUT_DIM].set(params_f32[-1][1])
    return w_packed.astype(jnp.bfloat16), b_final, params_f32


def _forward_impl(z_stack, w_packed, b_final):
    """z_stack: [G, MB, z_dim] -- G independent micro-batches, BN stats per micro-batch."""
    G, MB, z_dim = z_stack.shape
    if MB % 8 != 0 or MB < 2:
        # TODO(synk): masked per-feature sums would support micro-batches that are not
        # multiples of 8 (and keep the unmasked-reduce fast path otherwise).
        raise ValueError(f"micro-batch must be >= 2 and a multiple of 8, got {MB}")

    gps = _choose_groups_per_step(G, MB)
    rows_per_step = gps * MB
    total_rows = G * MB

    # Pack z: flatten micro-batches into rows, zero-pad features to 128 lanes, cast bf16
    # (padded lanes hit zero-padded weight rows, so the matmul result is exact).
    z_pad = jnp.zeros((total_rows, HIDDEN), jnp.bfloat16)
    z_pad = z_pad.at[:, :z_dim].set(z_stack.reshape(total_rows, z_dim).astype(jnp.bfloat16))

    cost = pl.CostEstimate(
        flops=2 * total_rows * HIDDEN * HIDDEN * N_LAYERS,
        transcendentals=G * (N_LAYERS - 1) * HIDDEN,            # rsqrt per BN feature
        bytes_accessed=(total_rows * HIDDEN * 2                 # z (bf16)
                        + N_LAYERS * HIDDEN * HIDDEN * 2        # weights (bf16)
                        + HIDDEN * 4                            # final bias (f32)
                        + total_rows * HIDDEN * 4),             # output (f32)
    )

    out = pl.pallas_call(
        functools.partial(_discriminator_kernel, micro_batch=MB),
        out_shape=jax.ShapeDtypeStruct((total_rows, HIDDEN), jnp.float32),
        grid_spec=pltpu.PrefetchScalarGridSpec(
            num_scalar_prefetch=0,
            grid=(G // gps,),
            in_specs=[
                pl.BlockSpec((rows_per_step, HIDDEN), lambda g: (g, 0)),        # z rows
                pl.BlockSpec((N_LAYERS, HIDDEN, HIDDEN), lambda g: (0, 0, 0)),  # weights (DMA once)
                pl.BlockSpec((1, HIDDEN), lambda g: (0, 0)),                    # final bias
            ],
            out_specs=pl.BlockSpec((rows_per_step, HIDDEN), lambda g: (g, 0)),
        ),
        compiler_params=pltpu.CompilerParams(
            dimension_semantics=("parallel",)),   # shards micro-batch chunks across v7x's 2 TCs
        cost_estimate=cost,
    )(z_pad, w_packed, b_final)

    return out.reshape(G, MB, HIDDEN)[..., :OUT_DIM]


@jax.jit
def discriminator_forward(z, w_packed, b_final):
    """Module-faithful forward: z [B, z_dim], BatchNorm statistics over the whole batch."""
    out = _forward_impl(z[None], w_packed, b_final)[0]   # [B, 2]
    return jnp.squeeze(out)                              # matches `self.net(z).squeeze()`


@jax.jit
def discriminator_forward_stacked(z_stack, w_packed, b_final):
    """Perf path: z_stack [G, B, z_dim] -- G independent micro-batches per call
    (BN per micro-batch), amortizing launch / weight-DMA / MXU weight-push costs."""
    return _forward_impl(z_stack, w_packed, b_final)      # [G, B, 2]


def reference_forward(z, w_packed, b_final):
    """Pure-JAX reference with matching bf16-MXU numerics but the CENTERED BN variance
    (validates the E[h^2]-mean^2 rewrite and the dropped pre-BN biases)."""
    batch, z_dim = z.shape
    x = jnp.zeros((batch, HIDDEN), jnp.bfloat16).at[:, :z_dim].set(z.astype(jnp.bfloat16))
    for i in range(N_LAYERS - 1):
        h = jnp.dot(x, w_packed[i], preferred_element_type=jnp.float32)
        mean = jnp.mean(h, axis=0, keepdims=True)
        d = h - mean
        var = jnp.mean(d * d, axis=0, keepdims=True)
        hn = d * jax.lax.rsqrt(var + BN_EPS)
        x = jnp.maximum(hn, LRELU_SLOPE * hn).astype(jnp.bfloat16)
    logits = jnp.dot(x, w_packed[N_LAYERS - 1], preferred_element_type=jnp.float32) + b_final
    return jnp.squeeze(logits[:, :OUT_DIM])


def reference_forward_f32(z, params_f32):
    """PyTorch-faithful all-f32 forward (training-mode BN, gamma=1/beta=0, biases=0)."""
    x = z
    for i in range(N_LAYERS - 1):
        w, b = params_f32[i]
        h = x @ w + b
        mean = jnp.mean(h, axis=0, keepdims=True)
        d = h - mean
        var = jnp.mean(d * d, axis=0, keepdims=True)
        hn = d * jax.lax.rsqrt(var + BN_EPS)
        x = jnp.maximum(hn, LRELU_SLOPE * hn)
    w, b = params_f32[-1]
    return jnp.squeeze(x @ w + b)


if __name__ == "__main__":
    key = jax.random.PRNGKey(0)
    k_p, k_z, k_zs = jax.random.split(key, 3)

    z_dim = 32
    batch = 8
    w_packed, b_final, params_f32 = make_params(z_dim, k_p)

    # 1) Module-faithful single batch (BN over the whole batch, like the PyTorch module).
    z = jax.random.normal(k_z, (batch, z_dim), dtype=jnp.float32)
    out = jax.block_until_ready(discriminator_forward(z, w_packed, b_final))
    assert out.shape == (batch, OUT_DIM), out.shape

    ref = reference_forward(z, w_packed, b_final)
    assert jnp.allclose(out, ref, atol=1e-3, rtol=1e-3), \
        f"max err vs bf16 reference: {float(jnp.max(jnp.abs(out - ref)))}"

    ref32 = reference_forward_f32(z, params_f32)
    assert jnp.allclose(out, ref32, atol=5e-2, rtol=5e-2), \
        f"max err vs f32 reference: {float(jnp.max(jnp.abs(out - ref32)))}"

    # 2) Stacked micro-batches (perf path: one call, per-micro-batch BN, big-M matmuls).
    G = 8
    z_stack = jax.random.normal(k_zs, (G, batch, z_dim), dtype=jnp.float32)
    outs = jax.block_until_ready(discriminator_forward_stacked(z_stack, w_packed, b_final))
    assert outs.shape == (G, batch, OUT_DIM), outs.shape
    refs = jnp.stack([reference_forward(z_stack[g], w_packed, b_final) for g in range(G)])
    assert jnp.allclose(outs, refs, atol=1e-3, rtol=1e-3), \
        f"max err (stacked) vs bf16 reference: {float(jnp.max(jnp.abs(outs - refs)))}"

    print("KERNEL_OK")
</pallas_src>

<mosaic_0001>
module attributes {stable_mosaic.version = 11 : i64} {
  func.func @_discriminator_kernel(%arg0: i32, %arg1: memref<8x128xbf16, #tpu.memory_space<vmem>>, %arg2: memref<5x128x128xbf16, #tpu.memory_space<vmem>>, %arg3: memref<1x128xf32, #tpu.memory_space<vmem>>, %arg4: memref<8x128xf32, #tpu.memory_space<vmem>>) attributes {dimension_semantics = [#tpu.dimension_semantics<parallel>], iteration_bounds = array<i64: 1>, scalar_prefetch = 0 : i64, scratch_operands = 0 : i64, tpu.core_type = #tpu.core_type<tc>, window_params = [{transform_indices = @transform_0, window_bounds = array<i64: 8, 128>}, {pipeline_mode = #tpu.pipeline_mode<synchronous>, transform_indices = @transform_1, window_bounds = array<i64: 5, 128, 128>}, {pipeline_mode = #tpu.pipeline_mode<synchronous>, transform_indices = @transform_2, window_bounds = array<i64: 1, 128>}, {transform_indices = @transform_3, window_bounds = array<i64: 8, 128>}]} {
    %c0 = arith.constant 0 : index
    %c0_0 = arith.constant 0 : index
    %0 = vector.load %arg1[%c0, %c0_0] : memref<8x128xbf16, #tpu.memory_space<vmem>>, vector<8x128xbf16>
    %c0_1 = arith.constant 0 : index
    %c0_2 = arith.constant 0 : index
    %c0_3 = arith.constant 0 : index
    %1 = vector.load %arg2[%c0_1, %c0_2, %c0_3] : memref<5x128x128xbf16, #tpu.memory_space<vmem>>, vector<1x128x128xbf16>
    %2 = vector.shape_cast %1 : vector<1x128x128xbf16> to vector<128x128xbf16>
    %cst = arith.constant dense<0.000000e+00> : vector<8x128xf32>
    %3 = tpu.matmul %0, %2, %cst {dimension_numbers = #tpu.dot_dimension_numbers<[1], [0], [0], [1], [0, 0, 1, 1], [], []>} : vector<8x128xbf16>, vector<128x128xbf16>, vector<8x128xf32> -> vector<8x128xf32>
    %cst_4 = arith.constant dense<0.000000e+00> : vector<128xf32>
    %4 = vector.multi_reduction <add>, %3, %cst_4 [0] : vector<8x128xf32> to vector<128xf32>
    %5 = vector.shape_cast %4 : vector<128xf32> to vector<1x128xf32>
    %6 = arith.mulf %3, %3 : vector<8x128xf32>
    %cst_5 = arith.constant dense<0.000000e+00> : vector<128xf32>
    %7 = vector.multi_reduction <add>, %6, %cst_5 [0] : vector<8x128xf32> to vector<128xf32>
    %8 = vector.shape_cast %7 : vector<128xf32> to vector<1x128xf32>
    %cst_6 = arith.constant 1.250000e-01 : f32
    %9 = vector.broadcast %cst_6 : f32 to vector<1x128xf32>
    %10 = arith.mulf %5, %9 : vector<1x128xf32>
    %cst_7 = arith.constant 1.250000e-01 : f32
    %11 = vector.broadcast %cst_7 : f32 to vector<1x128xf32>
    %12 = arith.mulf %8, %11 : vector<1x128xf32>
    %13 = arith.mulf %10, %10 : vector<1x128xf32>
    %14 = arith.subf %12, %13 : vector<1x128xf32>
    %15 = vector.broadcast %10 : vector<1x128xf32> to vector<8x128xf32>
    %16 = arith.subf %3, %15 : vector<8x128xf32>
    %cst_8 = arith.constant 9.99999974E-6 : f32
    %17 = vector.broadcast %cst_8 : f32 to vector<1x128xf32>
    %18 = arith.addf %14, %17 : vector<1x128xf32>
    %19 = math.rsqrt %18 : vector<1x128xf32>
    %20 = vector.broadcast %19 : vector<1x128xf32> to vector<8x128xf32>
    %21 = arith.mulf %16, %20 : vector<8x128xf32>
    %cst_9 = arith.constant 2.000000e-01 : f32
    %22 = vector.broadcast %cst_9 : f32 to vector<8x128xf32>
    %23 = arith.mulf %22, %21 : vector<8x128xf32>
    %24 = arith.maximumf %21, %23 : vector<8x128xf32>
    %25 = arith.truncf %24 : vector<8x128xf32> to vector<8x128xbf16>
    %c1 = arith.constant 1 : index
    %c0_10 = arith.constant 0 : index
    %c0_11 = arith.constant 0 : index
    %26 = vector.load %arg2[%c1, %c0_10, %c0_11] : memref<5x128x128xbf16, #tpu.memory_space<vmem>>, vector<1x128x128xbf16>
    %27 = vector.shape_cast %26 : vector<1x128x128xbf16> to vector<128x128xbf16>
    %cst_12 = arith.constant dense<0.000000e+00> : vector<8x128xf32>
    %28 = tpu.matmul %25, %27, %cst_12 {dimension_numbers = #tpu.dot_dimension_numbers<[1], [0], [0], [1], [0, 0, 1, 1], [], []>} : vector<8x128xbf16>, vector<128x128xbf16>, vector<8x128xf32> -> vector<8x128xf32>
    %cst_13 = arith.constant dense<0.000000e+00> : vector<128xf32>
    %29 = vector.multi_reduction <add>, %28, %cst_13 [0] : vector<8x128xf32> to vector<128xf32>
    %30 = vector.shape_cast %29 : vector<128xf32> to vector<1x128xf32>
    %31 = arith.mulf %28, %28 : vector<8x128xf32>
    %cst_14 = arith.constant dense<0.000000e+00> : vector<128xf32>
    %32 = vector.multi_reduction <add>, %31, %cst_14 [0] : vector<8x128xf32> to vector<128xf32>
    %33 = vector.shape_cast %32 : vector<128xf32> to vector<1x128xf32>
    %cst_15 = arith.constant 1.250000e-01 : f32
    %34 = vector.broadcast %cst_15 : f32 to vector<1x128xf32>
    %35 = arith.mulf %30, %34 : vector<1x128xf32>
    %cst_16 = arith.constant 1.250000e-01 : f32
    %36 = vector.broadcast %cst_16 : f32 to vector<1x128xf32>
    %37 = arith.mulf %33, %36 : vector<1x128xf32>
    %38 = arith.mulf %35, %35 : vector<1x128xf32>
    %39 = arith.subf %37, %38 : vector<1x128xf32>
    %40 = vector.broadcast %35 : vector<1x128xf32> to vector<8x128xf32>
    %41 = arith.subf %28, %40 : vector<8x128xf32>
    %cst_17 = arith.constant 9.99999974E-6 : f32
    %42 = vector.broadcast %cst_17 : f32 to vector<1x128xf32>
    %43 = arith.addf %39, %42 : vector<1x128xf32>
    %44 = math.rsqrt %43 : vector<1x128xf32>
    %45 = vector.broadcast %44 : vector<1x128xf32> to vector<8x128xf32>
    %46 = arith.mulf %41, %45 : vector<8x128xf32>
    %cst_18 = arith.constant 2.000000e-01 : f32
    %47 = vector.broadcast %cst_18 : f32 to vector<8x128xf32>
    %48 = arith.mulf %47, %46 : vector<8x128xf32>
    %49 = arith.maximumf %46, %48 : vector<8x128xf32>
    %50 = arith.truncf %49 : vector<8x128xf32> to vector<8x128xbf16>
    %c2 = arith.constant 2 : index
    %c0_19 = arith.constant 0 : index
    %c0_20 = arith.constant 0 : index
    %51 = vector.load %arg2[%c2, %c0_19, %c0_20] : memref<5x128x128xbf16, #tpu.memory_space<vmem>>, vector<1x128x128xbf16>
    %52 = vector.shape_cast %51 : vector<1x128x128xbf16> to vector<128x128xbf16>
    %cst_21 = arith.constant dense<0.000000e+00> : vector<8x128xf32>
    %53 = tpu.matmul %50, %52, %cst_21 {dimension_numbers = #tpu.dot_dimension_numbers<[1], [0], [0], [1], [0, 0, 1, 1], [], []>} : vector<8x128xbf16>, vector<128x128xbf16>, vector<8x128xf32> -> vector<8x128xf32>
    %cst_22 = arith.constant dense<0.000000e+00> : vector<128xf32>
    %54 = vector.multi_reduction <add>, %53, %cst_22 [0] : vector<8x128xf32> to vector<128xf32>
    %55 = vector.shape_cast %54 : vector<128xf32> to vector<1x128xf32>
    %56 = arith.mulf %53, %53 : vector<8x128xf32>
    %cst_23 = arith.constant dense<0.000000e+00> : vector<128xf32>
    %57 = vector.multi_reduction <add>, %56, %cst_23 [0] : vector<8x128xf32> to vector<128xf32>
    %58 = vector.shape_cast %57 : vector<128xf32> to vector<1x128xf32>
    %cst_24 = arith.constant 1.250000e-01 : f32
    %59 = vector.broadcast %cst_24 : f32 to vector<1x128xf32>
    %60 = arith.mulf %55, %59 : vector<1x128xf32>
    %cst_25 = arith.constant 1.250000e-01 : f32
    %61 = vector.broadcast %cst_25 : f32 to vector<1x128xf32>
    %62 = arith.mulf %58, %61 : vector<1x128xf32>
    %63 = arith.mulf %60, %60 : vector<1x128xf32>
    %64 = arith.subf %62, %63 : vector<1x128xf32>
    %65 = vector.broadcast %60 : vector<1x128xf32> to vector<8x128xf32>
    %66 = arith.subf %53, %65 : vector<8x128xf32>
    %cst_26 = arith.constant 9.99999974E-6 : f32
    %67 = vector.broadcast %cst_26 : f32 to vector<1x128xf32>
    %68 = arith.addf %64, %67 : vector<1x128xf32>
    %69 = math.rsqrt %68 : vector<1x128xf32>
    %70 = vector.broadcast %69 : vector<1x128xf32> to vector<8x128xf32>
    %71 = arith.mulf %66, %70 : vector<8x128xf32>
    %cst_27 = arith.constant 2.000000e-01 : f32
    %72 = vector.broadcast %cst_27 : f32 to vector<8x128xf32>
    %73 = arith.mulf %72, %71 : vector<8x128xf32>
    %74 = arith.maximumf %71, %73 : vector<8x128xf32>
    %75 = arith.truncf %74 : vector<8x128xf32> to vector<8x128xbf16>
    %c3 = arith.constant 3 : index
    %c0_28 = arith.constant 0 : index
    %c0_29 = arith.constant 0 : index
    %76 = vector.load %arg2[%c3, %c0_28, %c0_29] : memref<5x128x128xbf16, #tpu.memory_space<vmem>>, vector<1x128x128xbf16>
    %77 = vector.shape_cast %76 : vector<1x128x128xbf16> to vector<128x128xbf16>
    %cst_30 = arith.constant dense<0.000000e+00> : vector<8x128xf32>
    %78 = tpu.matmul %75, %77, %cst_30 {dimension_numbers = #tpu.dot_dimension_numbers<[1], [0], [0], [1], [0, 0, 1, 1], [], []>} : vector<8x128xbf16>, vector<128x128xbf16>, vector<8x128xf32> -> vector<8x128xf32>
    %cst_31 = arith.constant dense<0.000000e+00> : vector<128xf32>
    %79 = vector.multi_reduction <add>, %78, %cst_31 [0] : vector<8x128xf32> to vector<128xf32>
    %80 = vector.shape_cast %79 : vector<128xf32> to vector<1x128xf32>
    %81 = arith.mulf %78, %78 : vector<8x128xf32>
    %cst_32 = arith.constant dense<0.000000e+00> : vector<128xf32>
    %82 = vector.multi_reduction <add>, %81, %cst_32 [0] : vector<8x128xf32> to vector<128xf32>
    %83 = vector.shape_cast %82 : vector<128xf32> to vector<1x128xf32>
    %cst_33 = arith.constant 1.250000e-01 : f32
    %84 = vector.broadcast %cst_33 : f32 to vector<1x128xf32>
    %85 = arith.mulf %80, %84 : vector<1x128xf32>
    %cst_34 = arith.constant 1.250000e-01 : f32
    %86 = vector.broadcast %cst_34 : f32 to vector<1x128xf32>
    %87 = arith.mulf %83, %86 : vector<1x128xf32>
    %88 = arith.mulf %85, %85 : vector<1x128xf32>
    %89 = arith.subf %87, %88 : vector<1x128xf32>
    %90 = vector.broadcast %85 : vector<1x128xf32> to vector<8x128xf32>
    %91 = arith.subf %78, %90 : vector<8x128xf32>
    %cst_35 = arith.constant 9.99999974E-6 : f32
    %92 = vector.broadcast %cst_35 : f32 to vector<1x128xf32>
    %93 = arith.addf %89, %92 : vector<1x128xf32>
    %94 = math.rsqrt %93 : vector<1x128xf32>
    %95 = vector.broadcast %94 : vector<1x128xf32> to vector<8x128xf32>
    %96 = arith.mulf %91, %95 : vector<8x128xf32>
    %cst_36 = arith.constant 2.000000e-01 : f32
    %97 = vector.broadcast %cst_36 : f32 to vector<8x128xf32>
    %98 = arith.mulf %97, %96 : vector<8x128xf32>
    %99 = arith.maximumf %96, %98 : vector<8x128xf32>
    %100 = arith.truncf %99 : vector<8x128xf32> to vector<8x128xbf16>
    %c4 = arith.constant 4 : index
    %c0_37 = arith.constant 0 : index
    %c0_38 = arith.constant 0 : index
    %101 = vector.load %arg2[%c4, %c0_37, %c0_38] : memref<5x128x128xbf16, #tpu.memory_space<vmem>>, vector<1x128x128xbf16>
    %102 = vector.shape_cast %101 : vector<1x128x128xbf16> to vector<128x128xbf16>
    %cst_39 = arith.constant dense<0.000000e+00> : vector<8x128xf32>
    %103 = tpu.matmul %100, %102, %cst_39 {dimension_numbers = #tpu.dot_dimension_numbers<[1], [0], [0], [1], [0, 0, 1, 1], [], []>} : vector<8x128xbf16>, vector<128x128xbf16>, vector<8x128xf32> -> vector<8x128xf32>
    %c0_40 = arith.constant 0 : index
    %c0_41 = arith.constant 0 : index
    %104 = vector.load %arg3[%c0_40, %c0_41] : memref<1x128xf32, #tpu.memory_space<vmem>>, vector<1x128xf32>
    %105 = vector.broadcast %104 : vector<1x128xf32> to vector<8x128xf32>
    %106 = arith.addf %103, %105 : vector<8x128xf32>
    %c0_42 = arith.constant 0 : index
    %c0_43 = arith.constant 0 : index
    %107 = vector.load %arg4[%c0_42, %c0_43] : memref<8x128xf32, #tpu.memory_space<vmem>>, vector<8x128xf32>
    tpu.vector_store %arg4[%c0_42, %c0_43], %106 {strides = array<i32>} : memref<8x128xf32, #tpu.memory_space<vmem>>, vector<8x128xf32>,
    return
  }
  func.func @transform_0(%arg0: i32) -> (i32, i32) {
    %c0_i32 = arith.constant 0 : i32
    %c0_i32_0 = arith.constant 0 : i32
    return %arg0, %c0_i32 : i32, i32
  }
  func.func @transform_1(%arg0: i32) -> (i32, i32, i32) {
    %c0_i32 = arith.constant 0 : i32
    %c0_i32_0 = arith.constant 0 : i32
    %c0_i32_1 = arith.constant 0 : i32
    %c0_i32_2 = arith.constant 0 : i32
    return %c0_i32, %c0_i32_0, %c0_i32_1 : i32, i32, i32
  }
  func.func @transform_2(%arg0: i32) -> (i32, i32) {
    %c0_i32 = arith.constant 0 : i32
    %c0_i32_0 = arith.constant 0 : i32
    %c0_i32_1 = arith.constant 0 : i32
    return %c0_i32, %c0_i32_0 : i32, i32
  }
  func.func @transform_3(%arg0: i32) -> (i32, i32) {
    %c0_i32 = arith.constant 0 : i32
    %c0_i32_0 = arith.constant 0 : i32
    return %arg0, %c0_i32 : i32, i32
  }
}

</mosaic_0001>

<bundles_post_ra>
// kernel: discriminator_forward.1
= control target key start
LH: loop header
LB: loop body
LE: loop exit
PB: predicated region body
PF: predicated region fallthrough
CT: control target
= control target key end

     0   :  { %8 = vsyncpa [#allocation3], 0  ;;  %s926_s12 = smov [#allocation2]   ;;  %s1022_s0 = inlined_call_operand.vmem [shape: bf16[8,128], index: 0, kind: input, shape index: {}]   ;;  %s1023_s1 = inlined_call_operand.hbm [shape: bf16[5,128,128], index: 1, kind: input, shape index: {}]   ;;  %s1024_s2 = inlined_call_operand.vmem [shape: f32[1,128], index: 2, kind: input, shape index: {}]   ;;  %s1025_s3 = inlined_call_operand.vmem [shape: f32[8,128], index: 3, kind: output, shape index: {}]  }
   0x1   :  { %s16_s13 = sshll.u32 %s926_s12, 4  ;;  %s902_s16 = scalar_lea.hbm %s1023_s1, 5120  ;;  %s17_s13 = int_to_ptr.vmem [resolvable:$true] %s16_s13 }
   0x2   :  { %p903_p0 = scmp.ne.s32.totalorder %s1023_s1, %s902_s16  ;;  %p906_p1 = scmp.lt.u32.totalorder %s902_s16, %s1023_s1 }
   0x4   :  { %p908_p2 = pnand %p906_p1, %p903_p0 }
   0x6   :  { %911 = shalt.err (!%p908_p2)
}
   0x7   :  { %s912_s21 = scalar_lea.vmem %s17_s13, 5120  ;;  %p917_p4 = scmp.lt.s32.totalorder %s17_s13, %s17_s13 }
   0x8   :  { %p913_p3 = scmp.ne.s32.totalorder %s17_s13, %s912_s21  ;;  %p918_p5 = scmp.lt.s32.totalorder %s912_s21, %s912_s21 }
   0xa   :  { %p919_p6 = por %p918_p5, %p917_p4 }
   0xc   :  { %p920_p7 = pnand %p919_p6, %p913_p3 }
   0xe   :  { %923 = shalt.err (!%p920_p7)
}
   0xf   :  { %s927_s22 = smov 64   ;;  %s928_s23 = smov 4  }
  0x10   :  { %22 = dma.hbm_to_vmem [thread:$0]  %s1023_s1, 5120, %s17_s13, [#allocation3], %s927_s22, %s927_s22, %s928_s23  }
  0x11   :  { %924 = dma.done.wait [#allocation3], 5120  }
  0x12   :  { %925 = vsyncadd [#allocation3], 4294962176  ;;  %v929_v0 = vmov 0.0   ;;  %vm930_vm0 = vmmov 0   ;;  %v854_v1 = vld [vmem:[#allocation2] sm:$0xff]   ;;  %v855_v2 = vld [vmem:[#allocation2 + $0x8] sm:$0xff]  }
  0x13   :  { %749 = vmatprep.subr.bf16.mxu0 %v929_v0  ;;  %765 = vmatprep.mubr.msk.bf16.mxu0 %vm930_vm0, %v929_v0  ;;  %v856_v3 = vld [vmem:[#allocation2 + $0x10] sm:$0xff]   ;;  %v857_v4 = vld [vmem:[#allocation2 + $0x18] sm:$0xff]   ;;  %v858_v5 = vld [vmem:[#allocation2 + $0x20] sm:$0xff]  }
  0x14   :  { %769 = vmatprep.subr.bf16.mxu1 %v929_v0  ;;  %785 = vmatprep.mubr.msk.bf16.mxu1 %vm930_vm0, %v929_v0  ;;  %v859_v6 = vld [vmem:[#allocation2 + $0x28] sm:$0xff]   ;;  %v860_v7 = vld [vmem:[#allocation2 + $0x30] sm:$0xff]   ;;  %v861_v8 = vld [vmem:[#allocation2 + $0x38] sm:$0xff]  }
  0x15   :  { %750 = vmatpush3.bf16.msra.mxu0 %v854_v1  ;;  %v29_v9 = vld [vmem:[%s1022_s0] sm:$0xf]  ;;  %v863_v11 = vld [vmem:[#allocation2 + $0x48] sm:$0xff]   ;;  %v864_v12 = vld [vmem:[#allocation2 + $0x50] sm:$0xff]  }
  0x16   :  { %751 = vmatprep.subr.bf16.mxu0 %v929_v0  ;;  %v862_v10 = vld [vmem:[#allocation2 + $0x40] sm:$0xff]   ;;  %v865_v13 = vld [vmem:[#allocation2 + $0x58] sm:$0xff]   ;;  %v867_v15 = vld [vmem:[#allocation2 + $0x68] sm:$0xff]  }
  0x17   :  { %770 = vmatpush3.bf16.msra.mxu1 %v862_v10  ;;  %v866_v14 = vld [vmem:[#allocation2 + $0x60] sm:$0xff]   ;;  %v868_v16 = vld [vmem:[#allocation2 + $0x70] sm:$0xff]   ;;  %v869_v17 = vld [vmem:[#allocation2 + $0x78] sm:$0xff]  }
  0x18   :  { %771 = vmatprep.subr.bf16.mxu1 %v929_v0  ;;  %v870_v46 = vld [vmem:[#allocation2 + $0x80] sm:$0xff]   ;;  %v871_v47 = vld [vmem:[#allocation2 + $0x88] sm:$0xff]   ;;  %v872_v48 = vld [vmem:[#allocation2 + $0x90] sm:$0xff]  }
  0x19   :  { %752 = vmatpush3.bf16.msra.mxu0 %v855_v2  ;;  %v873_v49 = vld [vmem:[#allocation2 + $0x98] sm:$0xff]   ;;  %v874_v50 = vld [vmem:[#allocation2 + $0xa0] sm:$0xff]   ;;  %v875_v51 = vld [vmem:[#allocation2 + $0xa8] sm:$0xff]  }
  0x1a   :  { %753 = vmatprep.subr.bf16.mxu0 %v929_v0  ;;  %v876_v52 = vld [vmem:[#allocation2 + $0xb0] sm:$0xff]   ;;  %v877_v53 = vld [vmem:[#allocation2 + $0xb8] sm:$0xff]  }
  0x1b   :  { %772 = vmatpush3.bf16.msra.mxu1 %v863_v11 }
  0x1c   :  { %773 = vmatprep.subr.bf16.mxu1 %v929_v0 }
  0x1d   :  { %754 = vmatpush3.bf16.msra.mxu0 %v856_v3 }
  0x1e   :  { %755 = vmatprep.subr.bf16.mxu0 %v929_v0 }
  0x1f   :  { %774 = vmatpush3.bf16.msra.mxu1 %v864_v12 }
  0x20   :  { %775 = vmatprep.subr.bf16.mxu1 %v929_v0 }
  0x21   :  { %756 = vmatpush3.bf16.msra.mxu0 %v857_v4 }
  0x22   :  { %757 = vmatprep.subr.bf16.mxu0 %v929_v0 }
  0x23   :  { %776 = vmatpush3.bf16.msra.mxu1 %v865_v13 }
  0x24   :  { %777 = vmatprep.subr.bf16.mxu1 %v929_v0 }
  0x25   :  { %758 = vmatpush3.bf16.msra.mxu0 %v858_v5 }
  0x26   :  { %759 = vmatprep.subr.bf16.mxu0 %v929_v0 }
  0x27   :  { %778 = vmatpush3.bf16.msra.mxu1 %v866_v14 }
  0x28   :  { %779 = vmatprep.subr.bf16.mxu1 %v929_v0 }
  0x29   :  { %760 = vmatpush3.bf16.msra.mxu0 %v859_v6 }
  0x2a   :  { %761 = vmatprep.subr.bf16.mxu0 %v929_v0 }
  0x2b   :  { %780 = vmatpush3.bf16.msra.mxu1 %v867_v15 }
  0x2c   :  { %781 = vmatprep.subr.bf16.mxu1 %v929_v0 }
  0x2d   :  { %762 = vmatpush3.bf16.msra.mxu0 %v860_v7 }
  0x2e   :  { %763 = vmatprep.subr.bf16.mxu0 %v929_v0 }
  0x2f   :  { %782 = vmatpush3.bf16.msra.mxu1 %v868_v16 }
  0x30   :  { %783 = vmatprep.subr.bf16.mxu1 %v929_v0 }
  0x31   :  { %764 = vmatpush3.bf16.msra.mxu0 %v861_v8 }
  0x32   :  { %789 = vmatprep.subr.bf16.mxu0 %v929_v0 }
  0x33   :  { %784 = vmatpush3.bf16.msra.mxu1 %v869_v17 }
  0x34   :  { %766 = vmatmul.mubr.bf16.vlgmr.msra.gmra.mrb[0].mxu0 %v29_v9  ;;  %809 = vmatprep.subr.bf16.mxu1 %v929_v0 }
  0x35   :  { %805 = vmatprep.mubr.msk.bf16.mxu0 %vm930_vm0, %v929_v0  ;;  %790 = vmatpush3.bf16.msra.mxu0 %v870_v46 }
  0x36   :  { %791 = vmatprep.subr.bf16.mxu0 %v929_v0 }
  0x39   :  { %792 = vmatpush3.bf16.msra.mxu0 %v871_v47 }
  0x3a   :  { %793 = vmatprep.subr.bf16.mxu0 %v929_v0 }
  0x3d   :  { %794 = vmatpush3.bf16.msra.mxu0 %v872_v48 }
  0x3e   :  { %795 = vmatprep.subr.bf16.mxu0 %v929_v0 }
  0x41   :  { %796 = vmatpush3.bf16.msra.mxu0 %v873_v49 }
  0x42   :  { %797 = vmatprep.subr.bf16.mxu0 %v929_v0 }
  0x45   :  { %798 = vmatpush3.bf16.msra.mxu0 %v874_v50 }
  0x46   :  { %799 = vmatprep.subr.bf16.mxu0 %v929_v0 }
  0x49   :  { %800 = vmatpush3.bf16.msra.mxu0 %v875_v51 }
  0x4a   :  { %801 = vmatprep.subr.bf16.mxu0 %v929_v0 }
  0x4d   :  { %802 = vmatpush3.bf16.msra.mxu0 %v876_v52 }
  0x4e   :  { %803 = vmatprep.subr.bf16.mxu0 %v929_v0 }
  0x51   :  { %804 = vmatpush3.bf16.msra.mxu0 %v877_v53 }
  0x52   :  { %829 = vmatprep.subr.bf16.mxu0 %v929_v0 }
 0x107   :  { %v128_v18 = vpop.f32.mrb[0].mxu0 }
 0x108   :  { %v134_v19 = vrot.slane %v128_v18, 4  ;;  %v140_v20 = vmul.f32 %v128_v18, %v128_v18  ;;  %v767_v21 = vpop.f32.mrb[1].mxu0 }
 0x109   :  { %v131_v22 = vpop.f32.mrb[2].mxu0  ;;  %v880_v21 = vld [vmem:[#allocation2 + $0xd0] sm:$0xff]  }
 0x10a   :  { %v135_v23 = vadd.f32 %v134_v19, %v128_v18  ;;  %v141_v24 = vrot.slane %v140_v20, 4  ;;  %v768_v25 = vpop.f32.mrb[3].mxu0  ;;  %v878_v19 = vld [vmem:[#allocation2 + $0xc0] sm:$0xff]   ;;  %v881_v22 = vld [vmem:[#allocation2 + $0xd8] sm:$0xff]  }
 0x10b   :  { %v884_v25 = vld [vmem:[#allocation2 + $0xf0] sm:$0xff]  }
 0x10c   :  { %v136_v26 = vrot.slane %v135_v23, 2  ;;  %v142_v27 = vadd.f32 %v141_v24, %v140_v20  ;;  %v879_v20 = vld [vmem:[#allocation2 + $0xc8] sm:$0xff]  }
 0x10d   :  { %v883_v24 = vld [vmem:[#allocation2 + $0xe8] sm:$0xff]  }
 0x10e   :  { %v137_v28 = vadd.f32 %v136_v26, %v135_v23  ;;  %v143_v29 = vrot.slane %v142_v27, 2  ;;  %v882_v23 = vld [vmem:[#allocation2 + $0xe0] sm:$0xff]   ;;  %v885_v26 = vld [vmem:[#allocation2 + $0xf8] sm:$0xff]  }
 0x110   :  { %v138_v30 = vrot.slane %v137_v28, 1  ;;  %v144_v31 = vadd.f32 %v143_v29, %v142_v27 }
 0x112   :  { %v139_v32 = vadd.f32 %v138_v30, %v137_v28  ;;  %v145_v33 = vrot.slane %v144_v31, 1 }
 0x114   :  { %v146_v34 = vadd.f32 %v145_v33, %v144_v31  ;;  %v147_v35 = vmul.f32 0.125, %v139_v32 }
 0x116   :  { %v148_v36 = vmul.f32 0.125, %v146_v34  ;;  %v149_v37 = vmul.f32 %v147_v35, %v147_v35  ;;  %v151_v40 = vsub.f32 %v128_v18, %v147_v35 }
 0x118   :  { %v150_v38 = vsub.f32 %v148_v36, %v149_v37 }
 0x11a   :  { %v152_v39 = vadd.f32 1e-05, %v150_v38 }
 0x11c   :  { %894 = vrsqrt.f32 %v152_v39 }
 0x126   :  { %v895_v41 = vpop.eup %894 }
 0x127   :  { %v154_v42 = vmul.f32 %v895_v41, %v151_v40 }
 0x129   :  { %v155_v43 = vmul.f32 0.2, %v154_v42 }
 0x12b   :  { %v156_v44 = vmax.f32 %v154_v42, %v155_v43 }
 0x12d   :  { %v157_v45 = vpack.c.bf16 %v156_v44, %v156_v44 }
 0x12f   :  { %786 = vmatmul.mubr.bf16.vlgmr.msra.gmra.mrb[0].mxu1 %v157_v45 }
 0x130   :  { %825 = vmatprep.mubr.msk.bf16.mxu1 %vm930_vm0, %v929_v0  ;;  %810 = vmatpush3.bf16.msra.mxu1 %v878_v19 }
 0x131   :  { %811 = vmatprep.subr.bf16.mxu1 %v929_v0 }
 0x134   :  { %812 = vmatpush3.bf16.msra.mxu1 %v879_v20 }
 0x135   :  { %813 = vmatprep.subr.bf16.mxu1 %v929_v0 }
 0x138   :  { %814 = vmatpush3.bf16.msra.mxu1 %v880_v21 }
 0x139   :  { %815 = vmatprep.subr.bf16.mxu1 %v929_v0 }
 0x13c   :  { %816 = vmatpush3.bf16.msra.mxu1 %v881_v22 }
 0x13d   :  { %817 = vmatprep.subr.bf16.mxu1 %v929_v0 }
 0x140   :  { %818 = vmatpush3.bf16.msra.mxu1 %v882_v23 }
 0x141   :  { %819 = vmatprep.subr.bf16.mxu1 %v929_v0 }
 0x144   :  { %820 = vmatpush3.bf16.msra.mxu1 %v883_v24 }
 0x145   :  { %821 = vmatprep.subr.bf16.mxu1 %v929_v0 }
 0x148   :  { %822 = vmatpush3.bf16.msra.mxu1 %v884_v25 }
 0x149   :  { %823 = vmatprep.subr.bf16.mxu1 %v929_v0 }
 0x14c   :  { %824 = vmatpush3.bf16.msra.mxu1 %v885_v26 }
 0x202   :  { %v257_v54 = vpop.f32.mrb[0].mxu1 }
 0x203   :  { %v263_v55 = vrot.slane %v257_v54, 4  ;;  %v269_v56 = vmul.f32 %v257_v54, %v257_v54  ;;  %v787_v57 = vpop.f32.mrb[1].mxu1 }
 0x204   :  { %v260_v58 = vpop.f32.mrb[2].mxu1  ;;  %v888_v57 = vld [vmem:[#allocation2 + $0x110] sm:$0xff]  }
 0x205   :  { %v264_v59 = vadd.f32 %v263_v55, %v257_v54  ;;  %v270_v60 = vrot.slane %v269_v56, 4  ;;  %v788_v61 = vpop.f32.mrb[3].mxu1  ;;  %v886_v55 = vld [vmem:[#allocation2 + $0x100] sm:$0xff]   ;;  %v889_v58 = vld [vmem:[#allocation2 + $0x118] sm:$0xff]  }
 0x206   :  { %v892_v61 = vld [vmem:[#allocation2 + $0x130] sm:$0xff]  }
 0x207   :  { %v265_v62 = vrot.slane %v264_v59, 2  ;;  %v271_v63 = vadd.f32 %v270_v60, %v269_v56  ;;  %v887_v56 = vld [vmem:[#allocation2 + $0x108] sm:$0xff]  }
 0x208   :  { %v891_v60 = vld [vmem:[#allocation2 + $0x128] sm:$0xff]  }
 0x209   :  { %v266_v1 = vadd.f32 %v265_v62, %v264_v59  ;;  %v272_v2 = vrot.slane %v271_v63, 2  ;;  %v890_v59 = vld [vmem:[#allocation2 + $0x120] sm:$0xff]   ;;  %v893_v62 = vld [vmem:[#allocation2 + $0x138] sm:$0xff]  }
 0x20b   :  { %v267_v3 = vrot.slane %v266_v1, 1  ;;  %v273_v4 = vadd.f32 %v272_v2, %v271_v63 }
 0x20d   :  { %v268_v5 = vadd.f32 %v267_v3, %v266_v1  ;;  %v274_v6 = vrot.slane %v273_v4, 1 }
 0x20f   :  { %v275_v7 = vadd.f32 %v274_v6, %v273_v4  ;;  %v276_v8 = vmul.f32 0.125, %v268_v5 }
 0x211   :  { %v277_v9 = vmul.f32 0.125, %v275_v7  ;;  %v278_v10 = vmul.f32 %v276_v8, %v276_v8  ;;  %v280_v13 = vsub.f32 %v257_v54, %v276_v8 }
 0x213   :  { %v279_v11 = vsub.f32 %v277_v9, %v278_v10 }
 0x215   :  { %v281_v12 = vadd.f32 1e-05, %v279_v11 }
 0x217   :  { %896 = vrsqrt.f32 %v281_v12 }
 0x221   :  { %v897_v14 = vpop.eup %896 }
 0x222   :  { %v283_v15 = vmul.f32 %v897_v14, %v280_v13 }
 0x224   :  { %v284_v16 = vmul.f32 0.2, %v283_v15 }
 0x226   :  { %v285_v17 = vmax.f32 %v283_v15, %v284_v16 }
 0x228   :  { %v286_v18 = vpack.c.bf16 %v285_v17, %v285_v17 }
 0x22a   :  { %806 = vmatmul.mubr.bf16.vlgmr.msra.gmra.mrb[4].mxu0 %v286_v18 }
 0x22b   :  { %845 = vmatprep.mubr.msk.bf16.mxu0 %vm930_vm0, %v929_v0  ;;  %830 = vmatpush3.bf16.msra.mxu0 %v886_v55 }
 0x22c   :  { %831 = vmatprep.subr.bf16.mxu0 %v929_v0 }
 0x22f   :  { %832 = vmatpush3.bf16.msra.mxu0 %v887_v56 }
 0x230   :  { %833 = vmatprep.subr.bf16.mxu0 %v929_v0 }
 0x233   :  { %834 = vmatpush3.bf16.msra.mxu0 %v888_v57 }
 0x234   :  { %835 = vmatprep.subr.bf16.mxu0 %v929_v0 }
 0x237   :  { %836 = vmatpush3.bf16.msra.mxu0 %v889_v58 }
 0x238   :  { %837 = vmatprep.subr.bf16.mxu0 %v929_v0 }
 0x23b   :  { %838 = vmatpush3.bf16.msra.mxu0 %v890_v59 }
 0x23c   :  { %839 = vmatprep.subr.bf16.mxu0 %v929_v0 }
 0x23f   :  { %840 = vmatpush3.bf16.msra.mxu0 %v891_v60 }
 0x240   :  { %841 = vmatprep.subr.bf16.mxu0 %v929_v0 }
 0x243   :  { %842 = vmatpush3.bf16.msra.mxu0 %v892_v61 }
 0x244   :  { %843 = vmatprep.subr.bf16.mxu0 %v929_v0 }
 0x247   :  { %844 = vmatpush3.bf16.msra.mxu0 %v893_v62 }
 0x2fd   :  { %v386_v27 = vpop.f32.mrb[4].mxu0 }
 0x2fe   :  { %v392_v28 = vrot.slane %v386_v27, 4  ;;  %v398_v29 = vmul.f32 %v386_v27, %v386_v27  ;;  %v807_v30 = vpop.f32.mrb[5].mxu0 }
 0x2ff   :  { %v389_v31 = vpop.f32.mrb[6].mxu0 }
 0x300   :  { %v393_v32 = vadd.f32 %v392_v28, %v386_v27  ;;  %v399_v33 = vrot.slane %v398_v29, 4  ;;  %v808_v34 = vpop.f32.mrb[7].mxu0 }
 0x302   :  { %v394_v35 = vrot.slane %v393_v32, 2  ;;  %v400_v36 = vadd.f32 %v399_v33, %v398_v29 }
 0x304   :  { %v395_v37 = vadd.f32 %v394_v35, %v393_v32  ;;  %v401_v38 = vrot.slane %v400_v36, 2 }
 0x306   :  { %v396_v39 = vrot.slane %v395_v37, 1  ;;  %v402_v40 = vadd.f32 %v401_v38, %v400_v36 }
 0x308   :  { %v397_v41 = vadd.f32 %v396_v39, %v395_v37  ;;  %v403_v42 = vrot.slane %v402_v40, 1 }
 0x30a   :  { %v404_v43 = vadd.f32 %v403_v42, %v402_v40  ;;  %v405_v44 = vmul.f32 0.125, %v397_v41 }
 0x30c   :  { %v406_v45 = vmul.f32 0.125, %v404_v43  ;;  %v407_v46 = vmul.f32 %v405_v44, %v405_v44  ;;  %v409_v49 = vsub.f32 %v386_v27, %v405_v44  ;;  %v695_v27 = vld [vmem:[%s1024_s2] ss:$0 sm:$0xff] }
 0x30e   :  { %v408_v47 = vsub.f32 %v406_v45, %v407_v46 }
 0x310   :  { %v410_v48 = vadd.f32 1e-05, %v408_v47 }
 0x312   :  { %898 = vrsqrt.f32 %v410_v48 }
 0x31c   :  { %v899_v50 = vpop.eup %898 }
 0x31d   :  { %v412_v51 = vmul.f32 %v899_v50, %v409_v49 }
 0x31f   :  { %v413_v52 = vmul.f32 0.2, %v412_v51 }
 0x321   :  { %v414_v53 = vmax.f32 %v412_v51, %v413_v52 }
 0x323   :  { %v415_v54 = vpack.c.bf16 %v414_v53, %v414_v53 }
 0x325   :  { %826 = vmatmul.mubr.bf16.vlgmr.msra.gmra.mrb[4].mxu1 %v415_v54 }
 0x3f8   :  { %v515_v63 = vpop.f32.mrb[4].mxu1 }
 0x3f9   :  { %v521_v1 = vrot.slane %v515_v63, 4  ;;  %v527_v2 = vmul.f32 %v515_v63, %v515_v63  ;;  %v827_v3 = vpop.f32.mrb[5].mxu1 }
 0x3fa   :  { %v518_v4 = vpop.f32.mrb[6].mxu1 }
 0x3fb   :  { %v522_v5 = vadd.f32 %v521_v1, %v515_v63  ;;  %v528_v6 = vrot.slane %v527_v2, 4  ;;  %v828_v7 = vpop.f32.mrb[7].mxu1 }
 0x3fd   :  { %v523_v8 = vrot.slane %v522_v5, 2  ;;  %v529_v9 = vadd.f32 %v528_v6, %v527_v2 }
 0x3ff   :  { %v524_v10 = vadd.f32 %v523_v8, %v522_v5  ;;  %v530_v11 = vrot.slane %v529_v9, 2 }
 0x401   :  { %v525_v12 = vrot.slane %v524_v10, 1  ;;  %v531_v13 = vadd.f32 %v530_v11, %v529_v9 }
 0x403   :  { %v526_v14 = vadd.f32 %v525_v12, %v524_v10  ;;  %v532_v15 = vrot.slane %v531_v13, 1 }
 0x405   :  { %v533_v16 = vadd.f32 %v532_v15, %v531_v13  ;;  %v534_v0 = vmul.f32 0.125, %v526_v14 }
 0x407   :  { %v535_v17 = vmul.f32 0.125, %v533_v16  ;;  %v536_v18 = vmul.f32 %v534_v0, %v534_v0  ;;  %v538_v21 = vsub.f32 %v515_v63, %v534_v0 }
 0x409   :  { %v537_v19 = vsub.f32 %v535_v17, %v536_v18 }
 0x40b   :  { %v539_v20 = vadd.f32 1e-05, %v537_v19 }
 0x40d   :  { %900 = vrsqrt.f32 %v539_v20 }
 0x417   :  { %v901_v22 = vpop.eup %900 }
 0x418   :  { %v541_v23 = vmul.f32 %v901_v22, %v538_v21 }
 0x41a   :  { %v542_v24 = vmul.f32 0.2, %v541_v23 }
 0x41c   :  { %v543_v25 = vmax.f32 %v541_v23, %v542_v24 }
 0x41e   :  { %v544_v26 = vpack.c.bf16 %v543_v25, %v543_v25 }
 0x420   :  { %846 = vmatmul.mubr.bf16.vlgmr.msra.gmra.mrb[8].mxu0 %v544_v26 }
 0x4f3   :  { %v651_v28 = vpop.f32.mrb[8].mxu0 }
 0x4f4   :  { %v652_v29 = vadd.f32 %v695_v27, %v651_v28  ;;  %v847_v30 = vpop.f32.mrb[9].mxu0 }
 0x4f5   :  { %v654_v31 = vpop.f32.mrb[10].mxu0 }
 0x4f6   :  { %657 = vst [vmem:[%s1025_s3] sm:$0xff] %v652_v29  ;;  %v848_v32 = vpop.f32.mrb[11].mxu0 }
 0x4f7   :  { %662 = vsyncpa [#allocation3], 1 }

</bundles_post_ra>
